<compile_context>
chip_gen: v5e
topology: v5e:2x2
jax: 0.10.0
libtpu: 0.0.40
codegen_flags: <defaults>
</compile_context>

<pallas_src>
import functools

import jax
import jax.numpy as jnp
from jax.experimental import pallas as pl
from jax.experimental.pallas import tpu as pltpu


def _depthwise_kernel(x_ref, scale_ref, shift_ref, wdw_ref, mask_ref,
                      wpw_ref, bpw_ref, o_ref, *, H, W, C, O):
    # x_ref:     (1, C, H*W)  one batch element; C on sublanes, H*W on lanes
    # scale_ref: (C, 1)       fused BN scale  (gamma / sqrt(var+eps))
    # shift_ref: (C, 1)       fused BN shift  (beta - mean*scale)
    # wdw_ref:   (9, C, 1)    depthwise 3x3 weights, tap-major
    # mask_ref:  (9, 1, H*W)  per-tap boundary masks (conv zero padding)
    # wpw_ref:   (O, C)       pointwise 1x1 weights
    # bpw_ref:   (O, 1)       pointwise bias
    # o_ref:     (1, O, H*W)  output (lane-dense store)
    HW = H * W

    x = x_ref[0]                                        # (C, HW), f32
    xbn = x * scale_ref[...] + shift_ref[...]           # BatchNorm (VPU)

    # Depthwise 3x3 conv (padding=1): 9 taps.  Each tap is a lane-roll of the
    # flattened image (runs on the XLU slot, keeps VMEM ld/st slots free)
    # times the per-channel weight; the precomputed mask zeroes positions
    # whose source pixel falls outside the image (== zero padding).
    acc = jnp.zeros((C, HW), jnp.float32)
    tap = 0
    for dh in (-1, 0, 1):
        for dw in (-1, 0, 1):
            s = dh * W + dw                             # flat source offset
            shifted = xbn if s == 0 else pltpu.roll(xbn, shift=(-s) % HW, axis=1)
            acc = acc + shifted * wdw_ref[tap] * mask_ref[tap]
            tap += 1

    # Pointwise 1x1 conv == (O, C) x (C, HW) matmul on the MXU.
    # bf16 operands + f32 accumulation (single-pass MXU, no HIGHEST).
    out = jnp.dot(wpw_ref[...].astype(jnp.bfloat16),
                  acc.astype(jnp.bfloat16),
                  preferred_element_type=jnp.float32)   # (O, HW)
    out = jnp.maximum(out + bpw_ref[...], 0.0)          # bias + ReLU
    o_ref[0] = out.astype(o_ref.dtype)


def depthwise_forward(x_nchw, params, *, use_stride=False, eps=1e-5):
    """Forward pass matching DepthWise.forward (training-mode BatchNorm)."""
    if use_stride:
        # TODO(synk): stride-2 depthwise variant not implemented as a Pallas
        # kernel (needs a strided-output stencil, not full-res compute+gather).
        raise NotImplementedError("use_stride=True path not implemented")

    gamma, beta, w_dw, w_pw, b_pw = params              # torch-layout weights
    N, C, H, W = x_nchw.shape
    O = w_pw.shape[0]
    HW = H * W

    # NCHW -> (N, C, H*W) is a free reshape (no transpose / data movement).
    # Kept in f32 here to match the f32 reference; for memory-bound production
    # use, accept/emit bf16 on v6e/v7x and keep the VPU math in f32.
    x = x_nchw.astype(jnp.float32).reshape(N, C, HW)

    # BatchNorm2d (train-mode forward): per-channel batch mean / biased var,
    # folded into a per-channel scale + shift applied inside the kernel.
    # TODO(synk): this is a second full-HBM pass over x; fuse into a small
    # preliminary Pallas reduction (or use running stats at inference).
    mean = jnp.mean(x, axis=(0, 2))
    var = jnp.mean((x - mean[None, :, None]) ** 2, axis=(0, 2))
    scale = gamma / jnp.sqrt(var + eps)
    shift = beta - mean * scale
    scale = scale.reshape(C, 1)
    shift = shift.reshape(C, 1)

    # Weight-layout conversion (free/tiny):
    #   depthwise torch (C,1,3,3) -> tap-major (9, C, 1), tap = kh*3 + kw
    #   pointwise torch (O,C,1,1) -> (O, C); bias -> (O, 1)
    wdw = jnp.transpose(w_dw[:, 0, :, :], (1, 2, 0)).reshape(9, C, 1)
    wpw = w_pw[:, :, 0, 0]
    bpw = b_pw.reshape(O, 1)

    # Per-tap validity masks over the flattened spatial axis (conv zero pad).
    rows = jnp.arange(H, dtype=jnp.int32)[:, None]      # (H, 1)
    cols = jnp.arange(W, dtype=jnp.int32)[None, :]      # (1, W)
    mask_list = []
    for dh in (-1, 0, 1):
        for dw in (-1, 0, 1):
            ok = ((rows + dh >= 0) & (rows + dh < H) &
                  (cols + dw >= 0) & (cols + dw < W))
            mask_list.append(ok.reshape(1, HW))
    masks = jnp.stack(mask_list).astype(jnp.float32)    # (9, 1, HW)

    kernel = functools.partial(_depthwise_kernel, H=H, W=W, C=C, O=O)

    out_flat = pl.pallas_call(
        kernel,
        out_shape=jax.ShapeDtypeStruct((N, O, HW), jnp.float32),
        grid_spec=pltpu.PrefetchScalarGridSpec(
            num_scalar_prefetch=0,
            grid=(N,),
            in_specs=[
                pl.BlockSpec((1, C, HW), lambda n: (n, 0, 0)),
                pl.BlockSpec((C, 1), lambda n: (0, 0)),
                pl.BlockSpec((C, 1), lambda n: (0, 0)),
                pl.BlockSpec((9, C, 1), lambda n: (0, 0, 0)),
                pl.BlockSpec((9, 1, HW), lambda n: (0, 0, 0)),
                pl.BlockSpec((O, C), lambda n: (0, 0)),
                pl.BlockSpec((O, 1), lambda n: (0, 0)),
            ],
            out_specs=pl.BlockSpec((1, O, HW), lambda n: (n, 0, 0)),
        ),
        compiler_params=pltpu.CompilerParams(
            dimension_semantics=("parallel",),           # batch across TCs
            vmem_limit_bytes=64 * 1024 * 1024,
        ),
    )(x, scale, shift, wdw, masks, wpw, bpw)

    # TODO(synk): for large H*W / C, add an H-row grid axis with a 1-row halo
    # (overlapping element-offset blocks) so per-step VMEM is rows*W*C and v7x
    # (64 MiB VMEM, 2 TCs) gets deeper pipelining + a second parallel axis.

    return out_flat.reshape(N, O, H, W)                  # already NCHW


def reference_forward(x_nchw, params, eps=1e-5):
    """Pure-JAX reference mirroring the PyTorch module (use_stride=False)."""
    gamma, beta, w_dw, w_pw, b_pw = params
    x = x_nchw.astype(jnp.float32)
    N, C, H, W = x.shape
    mean = jnp.mean(x, axis=(0, 2, 3))
    var = jnp.mean((x - mean[None, :, None, None]) ** 2, axis=(0, 2, 3))
    scale = gamma / jnp.sqrt(var + eps)
    shift = beta - mean * scale
    xbn = x * scale[None, :, None, None] + shift[None, :, None, None]

    xp = jnp.pad(xbn, ((0, 0), (0, 0), (1, 1), (1, 1)))
    acc = jnp.zeros_like(xbn)
    for kh in range(3):
        for kw in range(3):
            acc = acc + xp[:, :, kh:kh + H, kw:kw + W] * \
                w_dw[None, :, 0, kh, kw, None, None]

    out = jnp.einsum('nchw,oc->nohw', acc, w_pw[:, :, 0, 0],
                     precision='highest')
    out = out + b_pw[None, :, None, None]
    return jnp.maximum(out, 0.0)


if __name__ == "__main__":
    N, C, O, H, W = 2, 4, 8, 16, 16

    key = jax.random.PRNGKey(0)
    kx, kg, kb, kdw, kpw, kbp = jax.random.split(key, 6)

    x = jax.random.normal(kx, (N, C, H, W), jnp.float32)
    gamma = 1.0 + 0.1 * jax.random.normal(kg, (C,), jnp.float32)
    beta = 0.1 * jax.random.normal(kb, (C,), jnp.float32)
    w_dw = 0.3 * jax.random.normal(kdw, (C, 1, 3, 3), jnp.float32)   # depthwise
    w_pw = 0.3 * jax.random.normal(kpw, (O, C, 1, 1), jnp.float32)   # pointwise
    b_pw = 0.1 * jax.random.normal(kbp, (O,), jnp.float32)
    params = (gamma, beta, w_dw, w_pw, b_pw)

    out = depthwise_forward(x, params, use_stride=False)
    out = jax.block_until_ready(out)

    ref = reference_forward(x, params)
    assert out.shape == (N, O, H, W)
    # bf16 MXU operands (f32 accumulate) -> slightly relaxed tolerance.
    assert jnp.allclose(out, ref, atol=2e-2, rtol=2e-2), \
        float(jnp.max(jnp.abs(out - ref)))

    print("KERNEL_OK")
</pallas_src>

<mosaic_0001>
module attributes {stable_mosaic.version = 11 : i64} {
  func.func @_depthwise_kernel(%arg0: i32, %arg1: memref<1x4x256xf32, #tpu.memory_space<vmem>>, %arg2: memref<4x1xf32, #tpu.memory_space<vmem>>, %arg3: memref<4x1xf32, #tpu.memory_space<vmem>>, %arg4: memref<9x4x1xf32, #tpu.memory_space<vmem>>, %arg5: memref<9x1x256xf32, #tpu.memory_space<vmem>>, %arg6: memref<8x4xf32, #tpu.memory_space<vmem>>, %arg7: memref<8x1xf32, #tpu.memory_space<vmem>>, %arg8: memref<1x8x256xf32, #tpu.memory_space<vmem>>) attributes {dimension_semantics = [#tpu.dimension_semantics<parallel>], iteration_bounds = array<i64: 2>, scalar_prefetch = 0 : i64, scratch_operands = 0 : i64, tpu.core_type = #tpu.core_type<tc>, window_params = [{transform_indices = @transform_0, window_bounds = array<i64: 1, 4, 256>}, {pipeline_mode = #tpu.pipeline_mode<synchronous>, transform_indices = @transform_1, window_bounds = array<i64: 4, 1>}, {pipeline_mode = #tpu.pipeline_mode<synchronous>, transform_indices = @transform_2, window_bounds = array<i64: 4, 1>}, {pipeline_mode = #tpu.pipeline_mode<synchronous>, transform_indices = @transform_3, window_bounds = array<i64: 9, 4, 1>}, {pipeline_mode = #tpu.pipeline_mode<synchronous>, transform_indices = @transform_4, window_bounds = array<i64: 9, 1, 256>}, {pipeline_mode = #tpu.pipeline_mode<synchronous>, transform_indices = @transform_5, window_bounds = array<i64: 8, 4>}, {pipeline_mode = #tpu.pipeline_mode<synchronous>, transform_indices = @transform_6, window_bounds = array<i64: 8, 1>}, {transform_indices = @transform_7, window_bounds = array<i64: 1, 8, 256>}]} {
    %c0 = arith.constant 0 : index
    %c0_0 = arith.constant 0 : index
    %c0_1 = arith.constant 0 : index
    %0 = vector.load %arg1[%c0, %c0_0, %c0_1] : memref<1x4x256xf32, #tpu.memory_space<vmem>>, vector<1x4x256xf32>
    %1 = vector.shape_cast %0 : vector<1x4x256xf32> to vector<4x256xf32>
    %c0_2 = arith.constant 0 : index
    %c0_3 = arith.constant 0 : index
    %2 = vector.load %arg2[%c0_2, %c0_3] : memref<4x1xf32, #tpu.memory_space<vmem>>, vector<4x1xf32>
    %3 = vector.broadcast %2 : vector<4x1xf32> to vector<4x256xf32>
    %4 = arith.mulf %1, %3 : vector<4x256xf32>
    %c0_4 = arith.constant 0 : index
    %c0_5 = arith.constant 0 : index
    %5 = vector.load %arg3[%c0_4, %c0_5] : memref<4x1xf32, #tpu.memory_space<vmem>>, vector<4x1xf32>
    %6 = vector.broadcast %5 : vector<4x1xf32> to vector<4x256xf32>
    %7 = arith.addf %4, %6 : vector<4x256xf32>
    %cst = arith.constant 0.000000e+00 : f32
    %8 = vector.broadcast %cst : f32 to vector<4x256xf32>
    %c17_i32 = arith.constant 17 : i32
    %9 = tpu.dynamic_rotate %7 by %c17_i32 dim 1 : vector<4x256xf32>, i32 -> vector<4x256xf32>
    %c0_6 = arith.constant 0 : index
    %c0_7 = arith.constant 0 : index
    %c0_8 = arith.constant 0 : index
    %10 = vector.load %arg4[%c0_6, %c0_7, %c0_8] : memref<9x4x1xf32, #tpu.memory_space<vmem>>, vector<1x4x1xf32>
    %11 = vector.shape_cast %10 : vector<1x4x1xf32> to vector<4x1xf32>
    %12 = vector.broadcast %11 : vector<4x1xf32> to vector<4x256xf32>
    %13 = arith.mulf %9, %12 : vector<4x256xf32>
    %c0_9 = arith.constant 0 : index
    %c0_10 = arith.constant 0 : index
    %c0_11 = arith.constant 0 : index
    %14 = vector.load %arg5[%c0_9, %c0_10, %c0_11] : memref<9x1x256xf32, #tpu.memory_space<vmem>>, vector<1x1x256xf32>
    %15 = vector.shape_cast %14 : vector<1x1x256xf32> to vector<1x256xf32>
    %16 = vector.broadcast %15 : vector<1x256xf32> to vector<4x256xf32>
    %17 = arith.mulf %13, %16 : vector<4x256xf32>
    %18 = arith.addf %8, %17 : vector<4x256xf32>
    %c16_i32 = arith.constant 16 : i32
    %19 = tpu.dynamic_rotate %7 by %c16_i32 dim 1 : vector<4x256xf32>, i32 -> vector<4x256xf32>
    %c1 = arith.constant 1 : index
    %c0_12 = arith.constant 0 : index
    %c0_13 = arith.constant 0 : index
    %20 = vector.load %arg4[%c1, %c0_12, %c0_13] : memref<9x4x1xf32, #tpu.memory_space<vmem>>, vector<1x4x1xf32>
    %21 = vector.shape_cast %20 : vector<1x4x1xf32> to vector<4x1xf32>
    %22 = vector.broadcast %21 : vector<4x1xf32> to vector<4x256xf32>
    %23 = arith.mulf %19, %22 : vector<4x256xf32>
    %c1_14 = arith.constant 1 : index
    %c0_15 = arith.constant 0 : index
    %c0_16 = arith.constant 0 : index
    %24 = vector.load %arg5[%c1_14, %c0_15, %c0_16] : memref<9x1x256xf32, #tpu.memory_space<vmem>>, vector<1x1x256xf32>
    %25 = vector.shape_cast %24 : vector<1x1x256xf32> to vector<1x256xf32>
    %26 = vector.broadcast %25 : vector<1x256xf32> to vector<4x256xf32>
    %27 = arith.mulf %23, %26 : vector<4x256xf32>
    %28 = arith.addf %18, %27 : vector<4x256xf32>
    %c15_i32 = arith.constant 15 : i32
    %29 = tpu.dynamic_rotate %7 by %c15_i32 dim 1 : vector<4x256xf32>, i32 -> vector<4x256xf32>
    %c2 = arith.constant 2 : index
    %c0_17 = arith.constant 0 : index
    %c0_18 = arith.constant 0 : index
    %30 = vector.load %arg4[%c2, %c0_17, %c0_18] : memref<9x4x1xf32, #tpu.memory_space<vmem>>, vector<1x4x1xf32>
    %31 = vector.shape_cast %30 : vector<1x4x1xf32> to vector<4x1xf32>
    %32 = vector.broadcast %31 : vector<4x1xf32> to vector<4x256xf32>
    %33 = arith.mulf %29, %32 : vector<4x256xf32>
    %c2_19 = arith.constant 2 : index
    %c0_20 = arith.constant 0 : index
    %c0_21 = arith.constant 0 : index
    %34 = vector.load %arg5[%c2_19, %c0_20, %c0_21] : memref<9x1x256xf32, #tpu.memory_space<vmem>>, vector<1x1x256xf32>
    %35 = vector.shape_cast %34 : vector<1x1x256xf32> to vector<1x256xf32>
    %36 = vector.broadcast %35 : vector<1x256xf32> to vector<4x256xf32>
    %37 = arith.mulf %33, %36 : vector<4x256xf32>
    %38 = arith.addf %28, %37 : vector<4x256xf32>
    %c1_i32 = arith.constant 1 : i32
    %39 = tpu.dynamic_rotate %7 by %c1_i32 dim 1 : vector<4x256xf32>, i32 -> vector<4x256xf32>
    %c3 = arith.constant 3 : index
    %c0_22 = arith.constant 0 : index
    %c0_23 = arith.constant 0 : index
    %40 = vector.load %arg4[%c3, %c0_22, %c0_23] : memref<9x4x1xf32, #tpu.memory_space<vmem>>, vector<1x4x1xf32>
    %41 = vector.shape_cast %40 : vector<1x4x1xf32> to vector<4x1xf32>
    %42 = vector.broadcast %41 : vector<4x1xf32> to vector<4x256xf32>
    %43 = arith.mulf %39, %42 : vector<4x256xf32>
    %c3_24 = arith.constant 3 : index
    %c0_25 = arith.constant 0 : index
    %c0_26 = arith.constant 0 : index
    %44 = vector.load %arg5[%c3_24, %c0_25, %c0_26] : memref<9x1x256xf32, #tpu.memory_space<vmem>>, vector<1x1x256xf32>
    %45 = vector.shape_cast %44 : vector<1x1x256xf32> to vector<1x256xf32>
    %46 = vector.broadcast %45 : vector<1x256xf32> to vector<4x256xf32>
    %47 = arith.mulf %43, %46 : vector<4x256xf32>
    %48 = arith.addf %38, %47 : vector<4x256xf32>
    %c4 = arith.constant 4 : index
    %c0_27 = arith.constant 0 : index
    %c0_28 = arith.constant 0 : index
    %49 = vector.load %arg4[%c4, %c0_27, %c0_28] : memref<9x4x1xf32, #tpu.memory_space<vmem>>, vector<1x4x1xf32>
    %50 = vector.shape_cast %49 : vector<1x4x1xf32> to vector<4x1xf32>
    %51 = vector.broadcast %50 : vector<4x1xf32> to vector<4x256xf32>
    %52 = arith.mulf %7, %51 : vector<4x256xf32>
    %c4_29 = arith.constant 4 : index
    %c0_30 = arith.constant 0 : index
    %c0_31 = arith.constant 0 : index
    %53 = vector.load %arg5[%c4_29, %c0_30, %c0_31] : memref<9x1x256xf32, #tpu.memory_space<vmem>>, vector<1x1x256xf32>
    %54 = vector.shape_cast %53 : vector<1x1x256xf32> to vector<1x256xf32>
    %55 = vector.broadcast %54 : vector<1x256xf32> to vector<4x256xf32>
    %56 = arith.mulf %52, %55 : vector<4x256xf32>
    %57 = arith.addf %48, %56 : vector<4x256xf32>
    %c255_i32 = arith.constant 255 : i32
    %58 = tpu.dynamic_rotate %7 by %c255_i32 dim 1 : vector<4x256xf32>, i32 -> vector<4x256xf32>
    %c5 = arith.constant 5 : index
    %c0_32 = arith.constant 0 : index
    %c0_33 = arith.constant 0 : index
    %59 = vector.load %arg4[%c5, %c0_32, %c0_33] : memref<9x4x1xf32, #tpu.memory_space<vmem>>, vector<1x4x1xf32>
    %60 = vector.shape_cast %59 : vector<1x4x1xf32> to vector<4x1xf32>
    %61 = vector.broadcast %60 : vector<4x1xf32> to vector<4x256xf32>
    %62 = arith.mulf %58, %61 : vector<4x256xf32>
    %c5_34 = arith.constant 5 : index
    %c0_35 = arith.constant 0 : index
    %c0_36 = arith.constant 0 : index
    %63 = vector.load %arg5[%c5_34, %c0_35, %c0_36] : memref<9x1x256xf32, #tpu.memory_space<vmem>>, vector<1x1x256xf32>
    %64 = vector.shape_cast %63 : vector<1x1x256xf32> to vector<1x256xf32>
    %65 = vector.broadcast %64 : vector<1x256xf32> to vector<4x256xf32>
    %66 = arith.mulf %62, %65 : vector<4x256xf32>
    %67 = arith.addf %57, %66 : vector<4x256xf32>
    %c241_i32 = arith.constant 241 : i32
    %68 = tpu.dynamic_rotate %7 by %c241_i32 dim 1 : vector<4x256xf32>, i32 -> vector<4x256xf32>
    %c6 = arith.constant 6 : index
    %c0_37 = arith.constant 0 : index
    %c0_38 = arith.constant 0 : index
    %69 = vector.load %arg4[%c6, %c0_37, %c0_38] : memref<9x4x1xf32, #tpu.memory_space<vmem>>, vector<1x4x1xf32>
    %70 = vector.shape_cast %69 : vector<1x4x1xf32> to vector<4x1xf32>
    %71 = vector.broadcast %70 : vector<4x1xf32> to vector<4x256xf32>
    %72 = arith.mulf %68, %71 : vector<4x256xf32>
    %c6_39 = arith.constant 6 : index
    %c0_40 = arith.constant 0 : index
    %c0_41 = arith.constant 0 : index
    %73 = vector.load %arg5[%c6_39, %c0_40, %c0_41] : memref<9x1x256xf32, #tpu.memory_space<vmem>>, vector<1x1x256xf32>
    %74 = vector.shape_cast %73 : vector<1x1x256xf32> to vector<1x256xf32>
    %75 = vector.broadcast %74 : vector<1x256xf32> to vector<4x256xf32>
    %76 = arith.mulf %72, %75 : vector<4x256xf32>
    %77 = arith.addf %67, %76 : vector<4x256xf32>
    %c240_i32 = arith.constant 240 : i32
    %78 = tpu.dynamic_rotate %7 by %c240_i32 dim 1 : vector<4x256xf32>, i32 -> vector<4x256xf32>
    %c7 = arith.constant 7 : index
    %c0_42 = arith.constant 0 : index
    %c0_43 = arith.constant 0 : index
    %79 = vector.load %arg4[%c7, %c0_42, %c0_43] : memref<9x4x1xf32, #tpu.memory_space<vmem>>, vector<1x4x1xf32>
    %80 = vector.shape_cast %79 : vector<1x4x1xf32> to vector<4x1xf32>
    %81 = vector.broadcast %80 : vector<4x1xf32> to vector<4x256xf32>
    %82 = arith.mulf %78, %81 : vector<4x256xf32>
    %c7_44 = arith.constant 7 : index
    %c0_45 = arith.constant 0 : index
    %c0_46 = arith.constant 0 : index
    %83 = vector.load %arg5[%c7_44, %c0_45, %c0_46] : memref<9x1x256xf32, #tpu.memory_space<vmem>>, vector<1x1x256xf32>
    %84 = vector.shape_cast %83 : vector<1x1x256xf32> to vector<1x256xf32>
    %85 = vector.broadcast %84 : vector<1x256xf32> to vector<4x256xf32>
    %86 = arith.mulf %82, %85 : vector<4x256xf32>
    %87 = arith.addf %77, %86 : vector<4x256xf32>
    %c239_i32 = arith.constant 239 : i32
    %88 = tpu.dynamic_rotate %7 by %c239_i32 dim 1 : vector<4x256xf32>, i32 -> vector<4x256xf32>
    %c8 = arith.constant 8 : index
    %c0_47 = arith.constant 0 : index
    %c0_48 = arith.constant 0 : index
    %89 = vector.load %arg4[%c8, %c0_47, %c0_48] : memref<9x4x1xf32, #tpu.memory_space<vmem>>, vector<1x4x1xf32>
    %90 = vector.shape_cast %89 : vector<1x4x1xf32> to vector<4x1xf32>
    %91 = vector.broadcast %90 : vector<4x1xf32> to vector<4x256xf32>
    %92 = arith.mulf %88, %91 : vector<4x256xf32>
    %c8_49 = arith.constant 8 : index
    %c0_50 = arith.constant 0 : index
    %c0_51 = arith.constant 0 : index
    %93 = vector.load %arg5[%c8_49, %c0_50, %c0_51] : memref<9x1x256xf32, #tpu.memory_space<vmem>>, vector<1x1x256xf32>
    %94 = vector.shape_cast %93 : vector<1x1x256xf32> to vector<1x256xf32>
    %95 = vector.broadcast %94 : vector<1x256xf32> to vector<4x256xf32>
    %96 = arith.mulf %92, %95 : vector<4x256xf32>
    %97 = arith.addf %87, %96 : vector<4x256xf32>
    %c0_52 = arith.constant 0 : index
    %c0_53 = arith.constant 0 : index
    %98 = vector.load %arg6[%c0_52, %c0_53] : memref<8x4xf32, #tpu.memory_space<vmem>>, vector<8x4xf32>
    %99 = arith.truncf %98 : vector<8x4xf32> to vector<8x4xbf16>
    %100 = arith.truncf %97 : vector<4x256xf32> to vector<4x256xbf16>
    %cst_54 = arith.constant dense<0.000000e+00> : vector<8x256xf32>
    %101 = tpu.matmul %99, %100, %cst_54 {dimension_numbers = #tpu.dot_dimension_numbers<[1], [0], [0], [1], [0, 0, 1, 1], [], []>} : vector<8x4xbf16>, vector<4x256xbf16>, vector<8x256xf32> -> vector<8x256xf32>
    %c0_55 = arith.constant 0 : index
    %c0_56 = arith.constant 0 : index
    %102 = vector.load %arg7[%c0_55, %c0_56] : memref<8x1xf32, #tpu.memory_space<vmem>>, vector<8x1xf32>
    %103 = vector.broadcast %102 : vector<8x1xf32> to vector<8x256xf32>
    %104 = arith.addf %101, %103 : vector<8x256xf32>
    %cst_57 = arith.constant 0.000000e+00 : f32
    %105 = vector.broadcast %cst_57 : f32 to vector<8x256xf32>
    %106 = arith.maximumf %104, %105 : vector<8x256xf32>
    %c0_58 = arith.constant 0 : index
    %c0_59 = arith.constant 0 : index
    %c0_60 = arith.constant 0 : index
    %107 = vector.load %arg8[%c0_58, %c0_59, %c0_60] : memref<1x8x256xf32, #tpu.memory_space<vmem>>, vector<1x8x256xf32>
    %108 = vector.shape_cast %107 : vector<1x8x256xf32> to vector<8x256xf32>
    %109 = vector.shape_cast %106 : vector<8x256xf32> to vector<1x8x256xf32>
    tpu.vector_store %arg8[%c0_58, %c0_59, %c0_60], %109 {strides = array<i32>} : memref<1x8x256xf32, #tpu.memory_space<vmem>>, vector<1x8x256xf32>,
    return
  }
  func.func @transform_0(%arg0: i32) -> (i32, i32, i32) {
    %c0_i32 = arith.constant 0 : i32
    %c0_i32_0 = arith.constant 0 : i32
    %c0_i32_1 = arith.constant 0 : i32
    return %arg0, %c0_i32, %c0_i32_0 : i32, i32, i32
  }
  func.func @transform_1(%arg0: i32) -> (i32, i32) {
    %c0_i32 = arith.constant 0 : i32
    %c0_i32_0 = arith.constant 0 : i32
    %c0_i32_1 = arith.constant 0 : i32
    return %c0_i32, %c0_i32_0 : i32, i32
  }
  func.func @transform_2(%arg0: i32) -> (i32, i32) {
    %c0_i32 = arith.constant 0 : i32
    %c0_i32_0 = arith.constant 0 : i32
    %c0_i32_1 = arith.constant 0 : i32
    return %c0_i32, %c0_i32_0 : i32, i32
  }
  func.func @transform_3(%arg0: i32) -> (i32, i32, i32) {
    %c0_i32 = arith.constant 0 : i32
    %c0_i32_0 = arith.constant 0 : i32
    %c0_i32_1 = arith.constant 0 : i32
    %c0_i32_2 = arith.constant 0 : i32
    return %c0_i32, %c0_i32_0, %c0_i32_1 : i32, i32, i32
  }
  func.func @transform_4(%arg0: i32) -> (i32, i32, i32) {
    %c0_i32 = arith.constant 0 : i32
    %c0_i32_0 = arith.constant 0 : i32
    %c0_i32_1 = arith.constant 0 : i32
    %c0_i32_2 = arith.constant 0 : i32
    return %c0_i32, %c0_i32_0, %c0_i32_1 : i32, i32, i32
  }
  func.func @transform_5(%arg0: i32) -> (i32, i32) {
    %c0_i32 = arith.constant 0 : i32
    %c0_i32_0 = arith.constant 0 : i32
    %c0_i32_1 = arith.constant 0 : i32
    return %c0_i32, %c0_i32_0 : i32, i32
  }
  func.func @transform_6(%arg0: i32) -> (i32, i32) {
    %c0_i32 = arith.constant 0 : i32
    %c0_i32_0 = arith.constant 0 : i32
    %c0_i32_1 = arith.constant 0 : i32
    return %c0_i32, %c0_i32_0 : i32, i32
  }
  func.func @transform_7(%arg0: i32) -> (i32, i32, i32) {
    %c0_i32 = arith.constant 0 : i32
    %c0_i32_0 = arith.constant 0 : i32
    %c0_i32_1 = arith.constant 0 : i32
    return %arg0, %c0_i32, %c0_i32_0 : i32, i32, i32
  }
}

</mosaic_0001>

<bundles_post_ra>
// kernel: tpu_custom_call.1
= control target key start
LH: loop header
LB: loop body
LE: loop exit
PB: predicated region body
PF: predicated region fallthrough
CT: control target
= control target key end

     0   :  { %12 = vsyncpa [#allocation3], 0  ;;  %s1096_s0 = inlined_call_operand.vmem [shape: f32[2,4,256], index: 0, kind: input, shape index: {}]   ;;  %s1097_s1 = inlined_call_operand.vmem [shape: f32[4,1], index: 1, kind: input, shape index: {}]   ;;  %s1098_s2 = inlined_call_operand.vmem [shape: f32[4,1], index: 2, kind: input, shape index: {}]   ;;  %s1099_s3 = inlined_call_operand.vmem [shape: f32[9,4,1], index: 3, kind: input, shape index: {}]   ;;  %s1100_s4 = inlined_call_operand.vmem [shape: f32[9,1,256], index: 4, kind: input, shape index: {}]   ;;  %s1101_s5 = inlined_call_operand.vmem [shape: f32[8,4], index: 5, kind: input, shape index: {}]   ;;  %s1102_s6 = inlined_call_operand.vmem [shape: f32[8,1], index: 6, kind: input, shape index: {}]   ;;  %s1103_s7 = inlined_call_operand.hbm [shape: f32[2,8,256], index: 7, kind: output, shape index: {}]  }
   0x1   :  { %14 = vsyncpa [#allocation3 + $0x1], 0  ;;  %s913_s24 = smov 0   ;;  %s915_s25 = smov 0  }
   0x2   :  { %s917_s26 = smov 0   ;;  %s919_s27 = smov 0  }
   0x3 LB: > { %s934_s28 = sadd.s32 4294967295, %s861_s27   ;;  %s715_s29 = sadd.s32 4294967294, %s861_s27   ;;  %s861_s27 = sphi %s919_s27, %s1109_s27   ;;  %s857_s26 = sphi %s917_s26, %s1108_s26   ;;  %s853_s25 = sphi %s915_s25, %s1107_s25   ;;  %s849_s24 = sphi %s913_s24, %s1106_s24  }
   0x4   : > { %s938_s30 = sadd.s32 1, %s861_s27   ;;  %s179_s8 = sadd.s32 1, %s857_s26 }
   0x5   : > { %s176_s9 = ssub.s32 %s861_s27, %s938_s30  ;;  %p189_p0 = scmp.ne.s32.totalorder %s857_s26, %s853_s25 }
   0x6   : > { %p177_p1 = scmp.eq.s32.totalorder %s176_s9, 0  ;;  %p190_p2 = scmp.eq.s32.totalorder %s934_s28, 1 }
   0x7   : > { %p195_p3 = scmp.ne.s32.totalorder %s853_s25, %s849_s24  ;;  %p196_p4 = scmp.eq.s32.totalorder %s715_s29, 1 }
   0x8   : > { %s949_s10 = scalar_select %p177_p1, %s857_s26, %s179_s8  }
   0x9   : > { %p951_p5 = por %p190_p2, %p189_p0  ;;  %p955_p6 = por %p196_p4, %p195_p3 }
   0xa   : > { %p718_p7 = scmp.ge.s32.totalorder %s861_s27, 1  ;;  %p240_p8 = scmp.lt.s32.totalorder %s861_s27, 3 }
   0xc   : > { %p241_p9 = pnand %p718_p7, %p240_p8 }
   0xd   : > { %p272_p10 = scmp.lt.s32.totalorder (!%p241_p9), %s934_s28, 1  ;;  %s865_s22 = smov (!%p241_p9), 17  }
   0xe   : > { %244 = sbr.rel (%p241_p9) target bundleno = 482 (0x1e2), region = 48  ;;  %s866_s8 = smov (!%p241_p9), 16  }
   0xf   : > { %s867_s14 = smov (!%p241_p9), 15   ;;  %s870_s19 = smov (!%p241_p9), 113  }
  0x10   : > { %s871_s20 = smov (!%p241_p9), 112   ;;  %s746_s16 = sshll.u32 (!%p241_p9), %s934_s28, 4 }
  0x11   : > { %s819_s13 = scalar_lea.hbm (!%p241_p9), %s1103_s7, 32 }
  0x13   : > { %v279_v0 = vld [vmem:[%s1097_s1] sm:$0xf]  ;;  %v863_v1 = vmov 0   ;;  %v728_v2 = vld [vmem:[%s1099_s3 + $0x10] sm:$0xf]  ;;  %s273_s17 = scalar_select %p272_p10, %s934_s28, 1  ;;  %v311_v63 = vlaneseq }
  0x14   : > { %796 = vset.pattern.permute.xlu0 %v863_v1  ;;  %797 = vset.pattern.permute.xlu1 %v863_v1  ;;  %v722_v3 = vld [vmem:[%s1099_s3 + $0x4] sm:$0xf]  ;;  %v290_v4 = vld [vmem:[%s1098_s2] sm:$0xf]  ;;  %v724_v6 = vld [vmem:[%s1099_s3 + $0x8] sm:$0xf] }
  0x15   : > { %282 = vperm.xlu0 %796, %v279_v0   ;;  %434 = vperm.xlu1 %797, %v728_v2   ;;  %v316_v5 = vld [vmem:[%s1099_s3] sm:$0xf]  ;;  %v726_v7 = vld [vmem:[%s1099_s3 + $0xc] sm:$0xf]  ;;  %v730_v8 = vld [vmem:[%s1099_s3 + $0x14] sm:$0xf] }
  0x16   : > { %798 = vset.pattern.permute.xlu2 %v863_v1  ;;  %v732_v9 = vld [vmem:[%s1099_s3 + $0x18] sm:$0xf]  ;;  %v864_v10 = vmov 839922192   ;;  %s745_s18 = sshll.u32 %s273_s17, 3  ;;  %vm448_vm0 = vcmask 1043456  }
  0x17   : > { %350 = vperm.xlu2 %798, %v722_v3   ;;  %v285_v11 = vunpack.c.l.s4 %v864_v10  ;;  %s276_s21 = scalar_lea.vmem %s1096_s0, %s745_s18  ;;  %v729_v22 = vld [vmem:[%s1100_s4 + $0x8] sm:$0x3]  ;;  %v734_v30 = vld [vmem:[%s1099_s3 + $0x1c] sm:$0xf]  ;;  %v736_v36 = vld [vmem:[%s1099_s3 + $0x20] sm:$0xf] }
  0x18   : > { %v278_v15 = vld [vmem:[%s276_s21] sm:$0xff]  ;;  %v446_v25 = vperm.slane %v729_v22, 1  ;;  %v445_v27 = vperm.slane %v729_v22, 0  ;;  %s868_s17 = smov 1   ;;  %s869_s18 = smov 127   ;;  %v1013_v0 = vand.u32 127, %v311_v63 }
  0x19   : > { %v286_v13 = vunpack.c.0.s8 %v285_v11  ;;  %s872_s21 = smov 111   ;;  %v592_v49 = vld [vmem:[%s1102_s6] sm:$0xff]  ;;  %vm602_vm9 = vcmask 1041408   ;;  %vm598_vm10 = vcmask 31744  }
  0x1a   : > { %v447_v28 = vrot.slane %v446_v25, 4  ;;  %vm343_vm1 = vcmp.lt.s32.totalorder %v1013_v0, 16  ;;  %vm313_vm2 = vcmp.lt.s32.totalorder %v1013_v0, 17  ;;  %vm375_vm3 = vcmp.lt.s32.totalorder %v1013_v0, 15 }
  0x1b   : > { %vm407_vm4 = vcmp.lt.s32.totalorder %v1013_v0, 1  ;;  %vm469_vm5 = vcmp.lt.s32.totalorder %v1013_v0, 127  ;;  %vm501_vm6 = vcmp.lt.s32.totalorder %v1013_v0, 113  ;;  %vm533_vm7 = vcmp.lt.s32.totalorder %v1013_v0, 112 }
  0x1c   : > { %v449_v34 = vsel %vm448_vm0, %v445_v27, %v447_v28  ;;  %vm565_vm8 = vcmp.lt.s32.totalorder %v1013_v0, 111 }
  0x1d   : > { %293 = vperm.xlu0 %796, %v290_v4   ;;  %319 = vperm.xlu1 %797, %v316_v5   ;;  %v723_v4 = vld [vmem:[%s1100_s4 + $0x2] sm:$0x3] }
  0x1f   : > { %382 = vperm.xlu2 %798, %v724_v6   ;;  %v324_v6 = vld [vmem:[%s1100_s4] sm:$0x3] }
  0x27   : > { %414 = vperm.xlu2 %798, %v726_v7  }
  0x2f   : > { %476 = vperm.xlu2 %798, %v730_v8  }
  0x37   : > { %508 = vperm.xlu2 %798, %v732_v9   ;;  %v725_v9 = vld [vmem:[%s1100_s4 + $0x4] sm:$0x3] }
  0x71   : > { %v351_v50 = vpop.permute.xlu2 %350 }
  0x79   : > { %v383_v51 = vpop.permute.xlu2 %382 }
  0x81   : > { %v415_v52 = vpop.permute.xlu2 %414 }
  0x87   : > { %v283_v12 = vpop.permute.xlu0 %282  ;;  %v435_v26 = vpop.permute.xlu1 %434 }
  0x88   : > { %v287_v14 = vperm.slane %v283_v12, %v286_v13  ;;  %v439_v29 = vperm.slane %v435_v26, %v286_v13  ;;  %v359_v12 = vperm.slane %v723_v4, 1  ;;  %v390_v26 = vperm.slane %v725_v9, 0 }
  0x89   : > { %v1009_v54 = vpop.permute.xlu2 %476 }
  0x8a   : > { %v289_v17 = vmul.f32 %v287_v14, %v278_v15  ;;  %v327_v15 = vperm.slane %v324_v6, 1 }
  0x8f   : > { %v294_v16 = vpop.permute.xlu0 %293  ;;  %v320_v53 = vpop.permute.xlu1 %319 }
  0x90   : > { %v298_v18 = vperm.slane %v294_v16, %v286_v13  ;;  %v358_v16 = vperm.slane %v723_v4, 0 }
  0x91   : > { %v1011_v57 = vpop.permute.xlu2 %508 }
  0x92   : > { %v300_v19 = vadd.f32 %v298_v18, %v289_v17  ;;  %v727_v18 = vld [vmem:[%s1100_s4 + $0x6] sm:$0x3] }
  0x94   : > { %302 = vst [vmem:[#allocation1] ss:$2 sm:$0xff] %v300_v19  ;;  %v441_v33 = vmul.f32 %v439_v29, %v300_v19 }
  0x96   : > { %v451_v35 = vmul.f32 %v449_v34, %v441_v33  ;;  %v422_v34 = vperm.slane %v727_v18, 0 }
  0x9b   : > { %v304_v20 = vld.sshfl [vmem:[#allocation1 + $0x8] sm:$0xff pattern:$0x75316420]  ;;  %v303_v21 = vld.sshfl [vmem:[#allocation1] sm:$0xff pattern:$0x75316420] }
  0x9c   : > { %309 = vrot.lane.b32.xlu2 %v304_v20, %s865_s22  ;;  %307 = vrot.lane.b32.xlu1 %v303_v21, %s865_s22  ;;  %334 = vst [vmem:[#allocation1] ss:$2 sm:$0xff] %v300_v19  ;;  %v391_v21 = vperm.slane %v725_v9, 1 }
  0xa3   : > { %v336_v23 = vld.sshfl [vmem:[#allocation1 + $0x8] sm:$0xff pattern:$0x75316420]  ;;  %v335_v24 = vld.sshfl [vmem:[#allocation1] sm:$0xff pattern:$0x75316420] }
  0xa4   : > { %341 = vrot.lane.b32.xlu0 %v336_v23, %s866_s8  ;;  %339 = vrot.lane.b32.xlu2 %v335_v24, %s866_s8  ;;  %366 = vst [vmem:[#allocation1] ss:$2 sm:$0xff] %v300_v19  ;;  %v326_v24 = vperm.slane %v324_v6, 0 }
  0xab   : > { %v368_v31 = vld.sshfl [vmem:[#allocation1 + $0x8] sm:$0xff pattern:$0x75316420]  ;;  %v367_v32 = vld.sshfl [vmem:[#allocation1] sm:$0xff pattern:$0x75316420] }
  0xac   : > { %373 = vrot.lane.b32.xlu1 %v368_v31, %s867_s14  ;;  %371 = vrot.lane.b32.xlu0 %v367_v32, %s867_s14  ;;  %398 = vst [vmem:[#allocation1] ss:$2 sm:$0xff] %v300_v19  ;;  %v423_v31 = vperm.slane %v727_v18, 1  ;;  %s269_s14 = sand.u32 1, %s853_s25  }
  0xad   : > { %540 = vperm.xlu2 %798, %v734_v30   ;;  %s719_s15 = sshll.u32 %s269_s14, 4  ;;  %s640_s28 = scalar_lea.sflag [#allocation3], %s269_s14 }
  0xb3   : > { %v400_v37 = vld.sshfl [vmem:[#allocation1 + $0x8] sm:$0xff pattern:$0x75316420]  ;;  %v399_v38 = vld.sshfl [vmem:[#allocation1] sm:$0xff pattern:$0x75316420] }
  0xb4   : > { %405 = vrot.lane.b32.xlu1 %v400_v37, %s868_s17  ;;  %403 = vrot.lane.b32.xlu0 %v399_v38, %s868_s17  ;;  %453 = vst [vmem:[#allocation1] ss:$2 sm:$0xff] %v451_v35 }
  0xb5   : > { %572 = vperm.xlu2 %798, %v736_v36  }
  0xbb   : > { %v1002_v39 = vld.sshfl [vmem:[#allocation1] sm:$0xff pattern:$0x75316420]  ;;  %v1004_v40 = vld.sshfl [vmem:[#allocation1 + $0x8] sm:$0xff pattern:$0x75316420] }
  0xbc   : > { %460 = vst [vmem:[#allocation1] ss:$2 sm:$0xff] %v300_v19 }
  0xc3   : > { %v462_v41 = vld.sshfl [vmem:[#allocation1 + $0x8] sm:$0xff pattern:$0x75316420]  ;;  %v461_v42 = vld.sshfl [vmem:[#allocation1] sm:$0xff pattern:$0x75316420] }
  0xc4   : > { %467 = vrot.lane.b32.xlu1 %v462_v41, %s869_s18  ;;  %465 = vrot.lane.b32.xlu0 %v461_v42, %s869_s18  ;;  %492 = vst [vmem:[#allocation1] ss:$2 sm:$0xff] %v300_v19  ;;  %v731_v42 = vld [vmem:[%s1100_s4 + $0xa] sm:$0x3] }
  0xcb   : > { %v494_v43 = vld.sshfl [vmem:[#allocation1 + $0x8] sm:$0xff pattern:$0x75316420]  ;;  %v493_v44 = vld.sshfl [vmem:[#allocation1] sm:$0xff pattern:$0x75316420] }
  0xcc   : > { %499 = vrot.lane.b32.xlu1 %v494_v43, %s870_s19  ;;  %497 = vrot.lane.b32.xlu0 %v493_v44, %s870_s19  ;;  %524 = vst [vmem:[#allocation1] ss:$2 sm:$0xff] %v300_v19  ;;  %s651_s19 = scalar_lea.hbm %s1103_s7, %s746_s16 }
  0xcd   : > { %s655_s22 = sshll.u32 %s651_s19, 4  ;;  %s656_s22 = int_to_ptr.hbm [resolvable:$true] %s655_s22 }
  0xce   : > { %s813_s23 = sshra.s32 %s656_s22, 4  ;;  %s814_s23 = int_to_ptr.hbm [resolvable:$true] %s813_s23 }
  0xcf   : > { %s815_s29 = scalar_lea.hbm %s814_s23, 16  ;;  %p820_p0 = scmp.lt.s32.totalorder %s814_s23, %s1103_s7 }
  0xd0   : > { %p816_p11 = scmp.ne.s32.totalorder %s814_s23, %s815_s29  ;;  %p821_p1 = scmp.lt.s32.totalorder %s819_s13, %s815_s29 }
  0xd2   : > { %p817_p12 = pnand %p816_p11, %p951_p5  ;;  %p822_p2 = por %p821_p1, %p820_p0 }
  0xd3   : > { %v526_v45 = vld.sshfl [vmem:[#allocation1 + $0x8] sm:$0xff pattern:$0x75316420]  ;;  %v525_v46 = vld.sshfl [vmem:[#allocation1] sm:$0xff pattern:$0x75316420] }
  0xd4   : > { %531 = vrot.lane.b32.xlu1 %v526_v45, %s871_s20  ;;  %529 = vrot.lane.b32.xlu0 %v525_v46, %s871_s20  ;;  %556 = vst [vmem:[#allocation1] ss:$2 sm:$0xff] %v300_v19  ;;  %s271_s20 = scalar_lea.vmem [#allocation2], %s719_s15  ;;  %p818_p13 = pneg %p817_p12 }
  0xd6   : > { %p823_p3 = pnand %p822_p2, %p818_p13 }
  0xdb   : > { %v558_v47 = vld.sshfl [vmem:[#allocation1 + $0x8] sm:$0xff pattern:$0x75316420]  ;;  %v557_v48 = vld.sshfl [vmem:[#allocation1] sm:$0xff pattern:$0x75316420] }
  0xdc   : > { %563 = vrot.lane.b32.xlu1 %v558_v47, %s872_s21  ;;  %561 = vrot.lane.b32.xlu0 %v557_v48, %s872_s21  ;;  %s653_s21 = sshll.u32 %s271_s20, 4  ;;  %s654_s21 = int_to_ptr.vmem [resolvable:$true] %s653_s21 }
  0xe4   : > { %595 = vperm.xlu0 %796, %v592_v49   ;;  %v733_v49 = vld [vmem:[%s1100_s4 + $0xc] sm:$0x3] }
  0xe5   : > { %v517_v6 = vperm.slane %v733_v49, 1 }
  0xf6   : > { %v310_v60 = vpop.permute.xlu2 %309 }
  0xfe   : > { %v340_v3 = vpop.permute.xlu2 %339 }
 0x10e   : > { %v308_v56 = vpop.permute.xlu1 %307 }
 0x10f   : > { %v314_v8 = vsel %vm313_vm2, %v308_v56, %v310_v60  ;;  %v315_v11 = vsel %vm313_vm2, %v310_v60, %v308_v56 }
 0x110   : > { %v323_v20 = vmul.f32 %v320_v53, %v314_v8  ;;  %v322_v25 = vmul.f32 %v320_v53, %v315_v11 }
 0x112   : > { %v331_v36 = vmul.f32 %v327_v15, %v323_v20  ;;  %v330_v38 = vmul.f32 %v326_v24, %v322_v25 }
 0x116   : > { %v342_v55 = vpop.permute.xlu0 %341 }
 0x117   : > { %v344_v5 = vsel %vm343_vm1, %v340_v3, %v342_v55  ;;  %v345_v7 = vsel %vm343_vm1, %v342_v55, %v340_v3 }
 0x118   : > { %v354_v13 = vmul.f32 %v351_v50, %v344_v5  ;;  %v353_v17 = vmul.f32 %v351_v50, %v345_v7  ;;  %v541_v50 = vpop.permute.xlu2 %540 }
 0x11a   : > { %v363_v30 = vmul.f32 %v359_v12, %v354_v13  ;;  %v362_v33 = vmul.f32 %v358_v16, %v353_v17 }
 0x11c   : > { %v365_v43 = vadd.f32 %v363_v30, %v331_v36  ;;  %v364_v47 = vadd.f32 %v362_v33, %v330_v38  ;;  %v588_v36 = vld [vmem:[%s1101_s5] sm:$0xff] }
 0x11e   : > { %v374_v58 = vpop.permute.xlu1 %373  ;;  %v372_v59 = vpop.permute.xlu0 %371 }
 0x11f   : > { %v376_v10 = vsel %vm375_vm3, %v372_v59, %v374_v58  ;;  %v377_v14 = vsel %vm375_vm3, %v374_v58, %v372_v59  ;;  %v485_v58 = vperm.slane %v731_v42, 1 }
 0x120   : > { %v386_v22 = vmul.f32 %v383_v51, %v376_v10  ;;  %v385_v27 = vmul.f32 %v383_v51, %v377_v14  ;;  %v737_v14 = vld [vmem:[%s1100_s4 + $0x10] sm:$0x3] }
 0x122   : > { %v395_v37 = vmul.f32 %v391_v21, %v386_v22  ;;  %v394_v41 = vmul.f32 %v390_v26, %v385_v27  ;;  %v573_v26 = vpop.permute.xlu2 %572 }
 0x124   : > { %v397_v51 = vadd.f32 %v395_v37, %v365_v43  ;;  %v396_v56 = vadd.f32 %v394_v41, %v364_v47  ;;  %v589_v43 = vpack.c.bf16 %v588_v36, %v588_v36 }
 0x126   : > { %v406_v61 = vpop.permute.xlu1 %405  ;;  %v404_v62 = vpop.permute.xlu0 %403 }
 0x127   : > { %v408_v19 = vsel %vm407_vm4, %v404_v62, %v406_v61  ;;  %v409_v23 = vsel %vm407_vm4, %v406_v61, %v404_v62  ;;  %v735_v62 = vld [vmem:[%s1100_s4 + $0xe] sm:$0x3] }
 0x128   : > { %v418_v32 = vmul.f32 %v415_v52, %v408_v19  ;;  %v417_v35 = vmul.f32 %v415_v52, %v409_v23  ;;  %v484_v52 = vperm.slane %v731_v42, 0  ;;  %v548_v8 = vperm.slane %v735_v62, 0 }
 0x129   : > { %v549_v9 = vperm.slane %v735_v62, 1  ;;  %v580_v19 = vperm.slane %v737_v14, 0 }
 0x12a   : > { %v427_v44 = vmul.f32 %v423_v31, %v418_v32  ;;  %v426_v48 = vmul.f32 %v422_v34, %v417_v35 }
 0x12c   : > { %v428_v5 = vadd.f32 %v426_v48, %v396_v56 }
 0x12e   : > { %v458_v16 = vadd.f32 %v1002_v39, %v428_v5 }
 0x136   : > { %v468_v1 = vpop.permute.xlu1 %467  ;;  %v466_v2 = vpop.permute.xlu0 %465 }
 0x137   : > { %v470_v45 = vsel %vm469_vm5, %v466_v2, %v468_v1  ;;  %v471_v46 = vsel %vm469_vm5, %v468_v1, %v466_v2  ;;  %v429_v1 = vadd.f32 %v427_v44, %v397_v51  ;;  %v516_v2 = vperm.slane %v733_v49, 0 }
 0x138   : > { %v479_v59 = vmul.f32 %v1009_v54, %v470_v45  ;;  %v480_v60 = vmul.f32 %v1009_v54, %v471_v46 }
 0x139   : > { %v459_v15 = vadd.f32 %v1004_v40, %v429_v1 }
 0x13a   : > { %v488_v10 = vmul.f32 %v484_v52, %v479_v59  ;;  %v489_v11 = vmul.f32 %v485_v58, %v480_v60 }
 0x13c   : > { %v490_v20 = vadd.f32 %v488_v10, %v458_v16  ;;  %v491_v21 = vadd.f32 %v489_v11, %v459_v15 }
 0x13e   : > { %v500_v28 = vpop.permute.xlu1 %499  ;;  %v498_v29 = vpop.permute.xlu0 %497 }
 0x13f   : > { %v502_v53 = vsel %vm501_vm6, %v498_v29, %v500_v28  ;;  %v503_v55 = vsel %vm501_vm6, %v500_v28, %v498_v29 }
 0x140   : > { %v511_v7 = vmul.f32 %v1011_v57, %v502_v53  ;;  %v512_v54 = vmul.f32 %v1011_v57, %v503_v55  ;;  %v581_v57 = vperm.slane %v737_v14, 1 }
 0x142   : > { %v520_v17 = vmul.f32 %v516_v2, %v511_v7  ;;  %v521_v18 = vmul.f32 %v517_v6, %v512_v54 }
 0x144   : > { %v522_v40 = vadd.f32 %v520_v17, %v490_v20  ;;  %v523_v31 = vadd.f32 %v521_v18, %v491_v21 }
 0x146   : > { %v532_v61 = vpop.permute.xlu1 %531  ;;  %v530_v63 = vpop.permute.xlu0 %529 }
 0x147   : > { %v534_v3 = vsel %vm533_vm7, %v530_v63, %v532_v61  ;;  %v535_v4 = vsel %vm533_vm7, %v532_v61, %v530_v63 }
 0x148   : > { %v543_v12 = vmul.f32 %v541_v50, %v534_v3  ;;  %v544_v13 = vmul.f32 %v541_v50, %v535_v4 }
 0x14a   : > { %v552_v22 = vmul.f32 %v548_v8, %v543_v12  ;;  %v553_v23 = vmul.f32 %v549_v9, %v544_v13 }
 0x14c   : > { %v554_v39 = vadd.f32 %v552_v22, %v522_v40  ;;  %v555_v33 = vadd.f32 %v553_v23, %v523_v31 }
 0x14e   : > { %v564_v24 = vpop.permute.xlu1 %563  ;;  %v562_v25 = vpop.permute.xlu0 %561 }
 0x14f   : > { %v566_v27 = vsel %vm565_vm8, %v562_v25, %v564_v24  ;;  %v567_v28 = vsel %vm565_vm8, %v564_v24, %v562_v25 }
 0x150   : > { %v575_v29 = vmul.f32 %v573_v26, %v566_v27  ;;  %v576_v30 = vmul.f32 %v573_v26, %v567_v28 }
 0x152   : > { %v584_v32 = vmul.f32 %v580_v19, %v575_v29  ;;  %v585_v0 = vmul.f32 %v581_v57, %v576_v30 }
 0x154   : > { %v586_v34 = vadd.f32 %v584_v32, %v554_v39  ;;  %v587_v35 = vadd.f32 %v585_v0, %v555_v33 }
 0x156   : > { %v590_v37 = vpack.c.bf16 %v586_v34, %v586_v34  ;;  %v591_v38 = vpack.c.bf16 %v587_v35, %v587_v35  ;;  %v596_v44 = vpop.permute.xlu0 %595 }
 0x158   : > { %v604_v41 = vsel %vm602_vm9, %v590_v37, 0  ;;  %v607_v42 = vsel %vm602_vm9, %v591_v38, 0 }
 0x159   : > { %616 = vmatpush.bf16.msra.mxu0 %v604_v41  ;;  %629 = vmatpush.bf16.msra.mxu1 %v607_v42 }
 0x15c   : > { %738 = vmatmul.msk.bf16.vlgmr.msra.gmra.mxu0 %vm598_vm10, %v589_v43  ;;  %739 = vmatmul.msk.bf16.vlgmr.msra.gmra.mxu1 %vm598_vm10, %v589_v43 }
 0x1d9   : > { %v618_v45 = vpop.f32.mrf.mxu0  ;;  %v631_v46 = vpop.f32.mrf.mxu1 }
 0x1da   : > { %v619_v47 = vadd.f32 %v618_v45, %v596_v44  ;;  %v632_v48 = vadd.f32 %v631_v46, %v596_v44 }
 0x1dc   : > { %v635_v49 = vmax.f32 %v619_v47, 0.0  ;;  %v636_v50 = vmax.f32 %v632_v48, 0.0 }
 0x1de   : > { %637 = vst [vmem:[%s271_s20] sm:$0xff] %v635_v49 }
 0x1df   : > { %638 = vst [vmem:[%s271_s20 + $0x8] sm:$0xff] %v636_v50 }
 0x1e0   : > { %826 = shalt.err (!%p823_p3)
}
 0x1e1   : > { %747 = dma.vmem_to_hbm [thread:$0]  (%p951_p5), %s654_s21, 256, %s656_s22, %s640_s28   ;;  %v620_v51 = vpop.f32.mrf.mxu0  ;;  %v633_v52 = vpop.f32.mrf.mxu1 }
 0x1e2 PF: > { %p753_p4 = scmp.ge.s32.totalorder %s861_s27, 2  ;;  %s667_s14 = sand.u32 1, %s849_s24  }
 0x1e3   : > { %s668_s17 = scalar_lea.sflag [#allocation3], %s667_s14 }
 0x1e4   : > { %p750_p7 = pnand %p753_p4, %p955_p6 }
 0x1e6   : > { %p751_p8 = pneg %p750_p7 }
 0x1e8   : > { %844 = dma.done.wait (%p751_p8), %s668_s17, 256  }
 0x1e9   : > { %846 = vsyncadd (%p751_p8), %s668_s17, 4294967040  ;;  %p17_p5 = scmp.ge.s32.totalorder %s938_s30, 4   ;;  %s1106_s24 = smov %s853_s25 }
 0x1ea   : > { %s1107_s25 = smov %s857_s26  ;;  %s1108_s26 = smov %s949_s10 }
 0x1eb   : > { %s1109_s27 = smov %s938_s30  ;;  %19 = sbr.rel (!%p17_p5) target bundleno = 3 (0x3), region = 99 }
 0x1f0   :  { %674 = vsyncpa [#allocation3], 1 }
 0x1f1   :  { %676 = vsyncpa [#allocation3 + $0x1], 1 }

</bundles_post_ra>
